<compile_context>
chip_gen: v7x
topology: tpu7x:2x2x1
jax: 0.10.0
libtpu: 0.0.40
codegen_flags: <defaults>
</compile_context>

<pallas_src>
import jax
import jax.numpy as jnp
from jax.experimental import pallas as pl
from jax.experimental.pallas import tpu as pltpu


def _round_up(x, m):
    return ((x + m - 1) // m) * m


def _cdiv(a, b):
    return (a + b - 1) // b


# ----------------------------------------------------------------------------
# Kernels: pixels-on-lanes layout (x tile is (C_in, hw_tile))
# ----------------------------------------------------------------------------
def _lowrank_kernel(x_ref, w1_ref, w2_ref, o_ref):
    # x_ref:  (C_in, hw_tile); w1_ref: (rank, C_in); w2_ref: (C_out, rank)
    h = jnp.dot(w1_ref[...], x_ref[...], preferred_element_type=jnp.float32)
    if x_ref.dtype != jnp.float32:
        # keep the second matmul's operand MXU-native (e.g. bf16)
        h = h.astype(x_ref.dtype)
    y = jnp.dot(w2_ref[...], h, preferred_element_type=jnp.float32)
    o_ref[...] = y.astype(o_ref.dtype)


def _folded_kernel(x_ref, w_ref, o_ref):
    # x_ref: (C_in, hw_tile); w_ref: (C_out, C_in) = W2 @ W1 (folded on host)
    y = jnp.dot(w_ref[...], x_ref[...], preferred_element_type=jnp.float32)
    o_ref[...] = y.astype(o_ref.dtype)


# ----------------------------------------------------------------------------
# Kernels: channels-on-lanes layout (x tile is (row_tile, C_in))
# ----------------------------------------------------------------------------
def _lowrank_kernel_cl(x_ref, w1t_ref, w2t_ref, o_ref):
    # x_ref: (row_tile, C_in); w1t_ref: (C_in, rank); w2t_ref: (rank, C_out)
    h = jnp.dot(x_ref[...], w1t_ref[...], preferred_element_type=jnp.float32)
    if x_ref.dtype != jnp.float32:
        h = h.astype(x_ref.dtype)
    y = jnp.dot(h, w2t_ref[...], preferred_element_type=jnp.float32)
    o_ref[...] = y.astype(o_ref.dtype)


def _folded_kernel_cl(x_ref, wt_ref, o_ref):
    # x_ref: (row_tile, C_in); wt_ref: (C_in, C_out) = (W2 @ W1)^T
    y = jnp.dot(x_ref[...], wt_ref[...], preferred_element_type=jnp.float32)
    o_ref[...] = y.astype(o_ref.dtype)


# ----------------------------------------------------------------------------
# Wrapper
# ----------------------------------------------------------------------------
def low_rank_pointwise_conv2d(x_nchw, w_reduce, w_expand, *,
                              hw_tile=None,
                              step_bytes_target=4 << 20,
                              vmem_budget_bytes=24 << 20,
                              vmem_limit_bytes=32 << 20,
                              allow_fold=True,
                              folded_weight=None):
    """
    x_nchw:   (N, C_in, H, W)
    w_reduce: (rank, C_in, 1, 1)   -- PyTorch conv_reduce.weight layout
    w_expand: (C_out, rank, 1, 1)  -- PyTorch conv_expand.weight layout
    folded_weight: optional precomputed (C_out, C_in) = W2 @ W1 (hoist the
                   fold out of the per-step path when weights are static).
    returns:  (N, C_out, H, W)
    """
    N, C_in, H, W = x_nchw.shape
    rank = w_reduce.shape[0]
    C_out = w_expand.shape[0]
    HW = H * W

    x_item = jnp.dtype(x_nchw.dtype).itemsize
    out_dtype = x_nchw.dtype
    out_item = jnp.dtype(out_dtype).itemsize
    w_item = jnp.dtype(w_reduce.dtype).itemsize

    w1 = w_reduce.reshape(rank, C_in)     # (rank, C_in)
    w2 = w_expand.reshape(C_out, rank)    # (C_out, rank)

    # ---- fold decision (MXU-shape aware + VMEM-footprint gated) -------------
    folded_w_bytes_db = 2 * C_out * C_in * w_item           # double-buffered
    lowrank_w_bytes_db = 2 * (rank * C_in + C_out * rank) * w_item
    fold_mxu = (C_in <= 256) and (C_out <= 256)              # one MXU tile
    fold_flops = 2 * rank * (C_in + C_out) >= C_in * C_out
    fold_fits = folded_w_bytes_db <= vmem_budget_bytes // 2  # leave room for tiles
    fold = allow_fold and fold_fits and (fold_mxu or fold_flops)

    if fold:
        w_bytes_db = folded_w_bytes_db
        f32_tmp_per_px = C_out * 4                           # f32 result pre-cast
        if folded_weight is None:
            folded_weight = jnp.dot(
                w2.astype(jnp.float32), w1.astype(jnp.float32),
                preferred_element_type=jnp.float32).astype(w_reduce.dtype)
    else:
        w_bytes_db = lowrank_w_bytes_db
        f32_tmp_per_px = (C_out + rank) * 4                  # f32 h and y

    per_px_vmem = 2 * C_in * x_item + 2 * C_out * out_item + f32_tmp_per_px
    traffic_per_px = C_in * x_item + C_out * out_item

    compiler_params_2d = pltpu.CompilerParams(
        dimension_semantics=("parallel", "parallel"),
        vmem_limit_bytes=vmem_limit_bytes)
    compiler_params_1d = pltpu.CompilerParams(
        dimension_semantics=("parallel",),
        vmem_limit_bytes=vmem_limit_bytes)

    # ---- layout selection ----------------------------------------------------
    # Small spatial maps with wide outputs: channels-on-lanes keeps stores
    # full lane width (pixels-on-lanes would degrade to masked ~HW-lane stores).
    use_channels_on_lanes = (HW < 256) and (C_out >= 128)

    if not use_channels_on_lanes:
        # ---------------- pixels-on-lanes (default) --------------------------
        x3 = x_nchw.reshape(N, C_in, HW)                     # free reshape

        if hw_tile is None:
            lanes_from_vmem = max(
                128, (max(vmem_budget_bytes - w_bytes_db, 0)) // per_px_vmem)
            lanes_from_traffic = max(128, step_bytes_target // traffic_per_px)
            hw_tile = int(min(lanes_from_vmem, lanes_from_traffic,
                              _round_up(HW, 128)))
            hw_tile = max(128, (hw_tile // 128) * 128)
            # Megacore balance (v7x dual TC): ensure >= 2 grid steps if possible.
            if N * _cdiv(HW, hw_tile) < 2 and hw_tile > 128:
                hw_tile = max(128, _round_up(_cdiv(HW, 2), 128))
        hw_tile = int(min(hw_tile, _round_up(HW, 128)))

        grid = (N, _cdiv(HW, hw_tile))
        out_shape = jax.ShapeDtypeStruct((N, C_out, HW), out_dtype)
        x_spec = pl.BlockSpec((None, C_in, hw_tile), lambda n, j: (n, 0, j))
        o_spec = pl.BlockSpec((None, C_out, hw_tile), lambda n, j: (n, 0, j))

        if fold:
            out3 = pl.pallas_call(
                _folded_kernel,
                out_shape=out_shape,
                grid_spec=pltpu.PrefetchScalarGridSpec(
                    num_scalar_prefetch=0, grid=grid,
                    in_specs=[x_spec,
                              pl.BlockSpec((C_out, C_in), lambda n, j: (0, 0))],
                    out_specs=o_spec),
                compiler_params=compiler_params_2d,
            )(x3, folded_weight)
        else:
            out3 = pl.pallas_call(
                _lowrank_kernel,
                out_shape=out_shape,
                grid_spec=pltpu.PrefetchScalarGridSpec(
                    num_scalar_prefetch=0, grid=grid,
                    in_specs=[x_spec,
                              pl.BlockSpec((rank, C_in), lambda n, j: (0, 0)),
                              pl.BlockSpec((C_out, rank), lambda n, j: (0, 0))],
                    out_specs=o_spec),
                compiler_params=compiler_params_2d,
            )(x3, w1, w2)

        return out3.reshape(N, C_out, H, W)

    # -------------------- channels-on-lanes fallback -------------------------
    rows = N * HW
    # one transpose outside the kernel (small data in this regime)
    x2d = jnp.transpose(x_nchw, (0, 2, 3, 1)).reshape(rows, C_in)

    rows_from_vmem = max(
        8, (max(vmem_budget_bytes - w_bytes_db, 0)) // per_px_vmem)
    rows_from_traffic = max(8, step_bytes_target // traffic_per_px)
    row_tile = int(min(rows_from_vmem, rows_from_traffic, _round_up(rows, 8)))
    row_tile = max(8, (row_tile // 8) * 8)
    if _cdiv(rows, row_tile) < 2 and row_tile > 8:           # megacore balance
        row_tile = max(8, _round_up(_cdiv(rows, 2), 8))

    grid = (_cdiv(rows, row_tile),)
    out_shape = jax.ShapeDtypeStruct((rows, C_out), out_dtype)
    x_spec = pl.BlockSpec((row_tile, C_in), lambda i: (i, 0))
    o_spec = pl.BlockSpec((row_tile, C_out), lambda i: (i, 0))

    if fold:
        wt = folded_weight.T                                  # (C_in, C_out)
        out2d = pl.pallas_call(
            _folded_kernel_cl,
            out_shape=out_shape,
            grid_spec=pltpu.PrefetchScalarGridSpec(
                num_scalar_prefetch=0, grid=grid,
                in_specs=[x_spec,
                          pl.BlockSpec((C_in, C_out), lambda i: (0, 0))],
                out_specs=o_spec),
            compiler_params=compiler_params_1d,
        )(x2d, wt)
    else:
        out2d = pl.pallas_call(
            _lowrank_kernel_cl,
            out_shape=out_shape,
            grid_spec=pltpu.PrefetchScalarGridSpec(
                num_scalar_prefetch=0, grid=grid,
                in_specs=[x_spec,
                          pl.BlockSpec((C_in, rank), lambda i: (0, 0)),
                          pl.BlockSpec((rank, C_out), lambda i: (0, 0))],
                out_specs=o_spec),
            compiler_params=compiler_params_1d,
        )(x2d, w1.T, w2.T)

    return jnp.transpose(out2d.reshape(N, H, W, C_out), (0, 3, 1, 2))


if __name__ == "__main__":
    key = jax.random.PRNGKey(0)
    k_x, k_w1, k_w2 = jax.random.split(key, 3)

    def reference(x, wr, we):
        N, C_in, H, W = x.shape
        rank = wr.shape[0]
        C_out = we.shape[0]
        xf = x.astype(jnp.float32).reshape(N, C_in, H * W)
        h = jnp.einsum('rc,ncp->nrp', wr.reshape(rank, C_in).astype(jnp.float32), xf)
        y = jnp.einsum('or,nrp->nop', we.reshape(C_out, rank).astype(jnp.float32), h)
        return y.reshape(N, C_out, H, W)

    # ---- Test 1: main pixels-on-lanes path (f32), fold + low-rank -----------
    N, C_in, H, W = 2, 8, 16, 16
    rank, C_out = 4, 16
    x = jax.random.normal(k_x, (N, C_in, H, W), dtype=jnp.float32)
    w_reduce = jax.random.normal(k_w1, (rank, C_in, 1, 1), dtype=jnp.float32) * 0.1
    w_expand = jax.random.normal(k_w2, (C_out, rank, 1, 1), dtype=jnp.float32) * 0.1
    ref = reference(x, w_reduce, w_expand)

    out_fold = jax.block_until_ready(
        low_rank_pointwise_conv2d(x, w_reduce, w_expand, allow_fold=True))
    out_lr = jax.block_until_ready(
        low_rank_pointwise_conv2d(x, w_reduce, w_expand, allow_fold=False))
    assert out_fold.shape == (N, C_out, H, W), out_fold.shape
    assert out_lr.shape == (N, C_out, H, W), out_lr.shape
    assert jnp.allclose(out_lr, ref, atol=1e-5, rtol=1e-5), "low-rank path mismatch"
    # Folded weights change rounding/association order slightly -> looser tol.
    assert jnp.allclose(out_fold, ref, atol=1e-4, rtol=1e-4), "folded path mismatch"

    # ---- Test 2: bf16 end-to-end (halves HBM traffic / VMEM) ----------------
    x_bf = x.astype(jnp.bfloat16)
    wr_bf = w_reduce.astype(jnp.bfloat16)
    we_bf = w_expand.astype(jnp.bfloat16)
    ref_bf = reference(x_bf, wr_bf, we_bf)
    out_bf = jax.block_until_ready(
        low_rank_pointwise_conv2d(x_bf, wr_bf, we_bf, allow_fold=True))
    assert out_bf.dtype == jnp.bfloat16
    assert jnp.allclose(out_bf.astype(jnp.float32), ref_bf,
                        atol=5e-2, rtol=5e-2), "bf16 path mismatch"

    # ---- Test 3: small-HW / wide-C_out channels-on-lanes fallback -----------
    k_x2, k_w12, k_w22 = jax.random.split(jax.random.PRNGKey(1), 3)
    N2, C_in2, H2, W2 = 1, 32, 7, 7
    rank2, C_out2 = 8, 128
    x2 = jax.random.normal(k_x2, (N2, C_in2, H2, W2), dtype=jnp.float32)
    wr2 = jax.random.normal(k_w12, (rank2, C_in2, 1, 1), dtype=jnp.float32) * 0.1
    we2 = jax.random.normal(k_w22, (C_out2, rank2, 1, 1), dtype=jnp.float32) * 0.1
    ref2 = reference(x2, wr2, we2)
    out2_fold = jax.block_until_ready(
        low_rank_pointwise_conv2d(x2, wr2, we2, allow_fold=True))
    out2_lr = jax.block_until_ready(
        low_rank_pointwise_conv2d(x2, wr2, we2, allow_fold=False))
    assert out2_fold.shape == (N2, C_out2, H2, W2), out2_fold.shape
    assert jnp.allclose(out2_lr, ref2, atol=1e-5, rtol=1e-5), \
        "channels-on-lanes low-rank mismatch"
    assert jnp.allclose(out2_fold, ref2, atol=1e-4, rtol=1e-4), \
        "channels-on-lanes folded mismatch"

    print("KERNEL_OK")
</pallas_src>

<mosaic_0001>
module attributes {stable_mosaic.version = 11 : i64} {
  func.func @_folded_kernel(%arg0: i32, %arg1: i32, %arg2: memref<1x8x256xf32, #tpu.memory_space<vmem>>, %arg3: memref<16x8xf32, #tpu.memory_space<vmem>>, %arg4: memref<1x16x256xf32, #tpu.memory_space<vmem>>) attributes {dimension_semantics = [#tpu.dimension_semantics<parallel>, #tpu.dimension_semantics<parallel>], iteration_bounds = array<i64: 2, 1>, scalar_prefetch = 0 : i64, scratch_operands = 0 : i64, tpu.core_type = #tpu.core_type<tc>, window_params = [{transform_indices = @transform_0, window_bounds = array<i64: 1, 8, 256>}, {pipeline_mode = #tpu.pipeline_mode<synchronous>, transform_indices = @transform_1, window_bounds = array<i64: 16, 8>}, {transform_indices = @transform_2, window_bounds = array<i64: 1, 16, 256>}]} {
    %c0 = arith.constant 0 : index
    %c0_0 = arith.constant 0 : index
    %0 = vector.load %arg3[%c0, %c0_0] : memref<16x8xf32, #tpu.memory_space<vmem>>, vector<16x8xf32>
    %c0_1 = arith.constant 0 : index
    %c0_2 = arith.constant 0 : index
    %c0_3 = arith.constant 0 : index
    %1 = vector.load %arg2[%c0_1, %c0_2, %c0_3] : memref<1x8x256xf32, #tpu.memory_space<vmem>>, vector<1x8x256xf32>
    %2 = vector.shape_cast %1 : vector<1x8x256xf32> to vector<8x256xf32>
    %cst = arith.constant dense<0.000000e+00> : vector<16x256xf32>
    %3 = tpu.matmul %0, %2, %cst {dimension_numbers = #tpu.dot_dimension_numbers<[1], [0], [0], [1], [0, 0, 1, 1], [], []>} : vector<16x8xf32>, vector<8x256xf32>, vector<16x256xf32> -> vector<16x256xf32>
    %c0_4 = arith.constant 0 : index
    %c0_5 = arith.constant 0 : index
    %c0_6 = arith.constant 0 : index
    %4 = vector.load %arg4[%c0_4, %c0_5, %c0_6] : memref<1x16x256xf32, #tpu.memory_space<vmem>>, vector<1x16x256xf32>
    %5 = vector.shape_cast %4 : vector<1x16x256xf32> to vector<16x256xf32>
    %6 = vector.shape_cast %3 : vector<16x256xf32> to vector<1x16x256xf32>
    tpu.vector_store %arg4[%c0_4, %c0_5, %c0_6], %6 {strides = array<i32>} : memref<1x16x256xf32, #tpu.memory_space<vmem>>, vector<1x16x256xf32>,
    return
  }
  func.func @transform_0(%arg0: i32, %arg1: i32) -> (i32, i32, i32) {
    %c0_i32 = arith.constant 0 : i32
    %c0_i32_0 = arith.constant 0 : i32
    return %arg0, %c0_i32, %arg1 : i32, i32, i32
  }
  func.func @transform_1(%arg0: i32, %arg1: i32) -> (i32, i32) {
    %c0_i32 = arith.constant 0 : i32
    %c0_i32_0 = arith.constant 0 : i32
    %c0_i32_1 = arith.constant 0 : i32
    return %c0_i32, %c0_i32_0 : i32, i32
  }
  func.func @transform_2(%arg0: i32, %arg1: i32) -> (i32, i32, i32) {
    %c0_i32 = arith.constant 0 : i32
    %c0_i32_0 = arith.constant 0 : i32
    return %arg0, %c0_i32, %arg1 : i32, i32, i32
  }
}

</mosaic_0001>

<bundles_post_ra>
// kernel: tpu_custom_call.1
= control target key start
LH: loop header
LB: loop body
LE: loop exit
PB: predicated region body
PF: predicated region fallthrough
CT: control target
= control target key end

     0   :  { %7 = vsyncpa [#allocation3], 0  ;;  %s776_s0 = inlined_call_operand.hbm [shape: f32[2,8,256], index: 0, kind: input, shape index: {}]   ;;  %s777_s1 = inlined_call_operand.vmem [shape: f32[16,8], index: 1, kind: input, shape index: {}]   ;;  %s778_s2 = inlined_call_operand.hbm [shape: f32[2,16,256], index: 2, kind: output, shape index: {}]  }
   0x1   :  { %9 = vsyncpa [#allocation3 + $0x1], 0 }
   0x2   :  { %10 = vsyncpa [#allocation4], 0 }
   0x3   :  { %12 = vsyncpa [#allocation4 + $0x1], 0  ;;  %s595_s9 = smov 0   ;;  %s597_s10 = smov 0  }
   0x4   :  { %s599_s11 = smov 0   ;;  %s601_s12 = smov 0  }
   0x5   :  { %s603_s13 = smov 0   ;;  %s605_s14 = smov 0  }
   0x6 LB: > { %s375_s15 = sadd.s32 4294967295, %s573_s14   ;;  %s376_s16 = sadd.s32 4294967294, %s573_s14   ;;  %s573_s14 = sphi %s605_s14, %s18_s14   ;;  %s569_s13 = sphi %s603_s13, %s794_s13   ;;  %s565_s12 = sphi %s601_s12, %s793_s12   ;;  %s561_s11 = sphi %s599_s11, %s792_s11   ;;  %s557_s10 = sphi %s597_s10, %s791_s10   ;;  %s553_s9 = sphi %s595_s9, %s790_s9  }
   0x7   : > { %s30_s17 = sadd.s32 1, %s569_s13  ;;  %s39_s18 = sadd.s32 1, %s561_s11 }
   0x8   : > { %p32_p0 = scmp.ge.s32.totalorder %s30_s17, 2  ;;  %p46_p1 = scmp.ne.s32.totalorder %s561_s11, %s557_s10 }
   0x9   : > { %p47_p2 = scmp.eq.s32.totalorder %s573_s14, 0  ;;  %p52_p3 = scmp.ne.s32.totalorder %s557_s10, %s553_s9 }
   0xa   : > { %s796_s17 = smov (%p32_p0, %s30_s17), 0  ;;  %p53_p5 = scmp.eq.s32.totalorder %s375_s15, 0 }
   0xb   : > { %p636_p4 = por %p47_p2, %p46_p1  ;;  %s34_s20 = ssub.s32 %s569_s13, %s796_s17 }
   0xc   : > { %p99_p6 = scmp.eq.s32.totalorder %s375_s15, 1  ;;  %p37_p7 = scmp.eq.s32.totalorder %s34_s20, 0 }
   0xd   : > { %p642_p8 = por %p53_p5, %p52_p3  ;;  %p105_p10 = scmp.eq.s32.totalorder %s376_s16, 1 }
   0xe   : > { %p646_p9 = por %p99_p6, %p46_p1  ;;  %p408_p13 = scmp.lt.s32.totalorder %s573_s14, 2 }
   0xf   : > { %s651_s23 = scalar_select %p37_p7, %s561_s11, %s39_s18  }
  0x10   : > { %s782_s22 = scalar_select %p646_p9, 1, 0 }
  0x11   : > { %p653_p11 = por %p105_p10, %p52_p3  ;;  %s128_s25 = sand.u32 1, %s561_s11  }
  0x12   : > { %s379_s26 = sshll.u32 %s128_s25, 4  ;;  %s392_s27 = sshll.u32 %s569_s13, 8 }
  0x13   : > { %s783_s24 = scalar_select %p653_p11, 1, 0 }
  0x14   : > { %s664_s30 = scalar_lea.hbm %s776_s0, %s392_s27  ;;  %s132_s3 = scalar_lea.vmem [#allocation2], %s379_s26 }
  0x15   : > { %s142_s4 = sshll.u32 %s132_s3, 4  ;;  %p670_p0 = pnand %p408_p13, %p636_p4  ;;  %s666_s4 = int_to_ptr.vmem [resolvable:$true] %s142_s4 }
  0x16   : > { %s129_s6 = scalar_lea.sflag [#allocation3], %s128_s25  ;;  %s461_s7 = scalar_lea.hbm %s664_s30, 256 }
  0x17   : > { %p462_p3 = scmp.ne.s32.totalorder %s664_s30, %s461_s7  ;;  %p463_p5 = pneg %p670_p0 }
  0x18   : > { %s466_s16 = scalar_lea.hbm %s776_s0, 512  ;;  %p467_p4 = scmp.lt.u32.totalorder %s664_s30, %s776_s0 }
  0x19   : > { %p464_p6 = pnand %p463_p5, %p462_p3  ;;  %p468_p10 = scmp.lt.u32.totalorder %s466_s16, %s461_s7 }
  0x1a   : > { %p470_p12 = scmp.lt.u32.totalorder %s461_s7, %s664_s30 }
  0x1b   : > { %p465_p7 = pneg %p464_p6  ;;  %p469_p13 = por %p468_p10, %p467_p4 }
  0x1d   : > { %p471_p1 = por %p470_p12, %p469_p13 }
  0x1f   : > { %p472_p2 = pnand %p471_p1, %p465_p7 }
  0x21   : > { %475 = shalt.err (!%p472_p2)
}
  0x22   : > { %s476_s20 = scalar_lea.vmem %s666_s4, 256  ;;  %s575_s25 = smov [#allocation2]  }
  0x23   : > { %p477_p3 = scmp.ne.s32.totalorder %s666_s4, %s476_s20  ;;  %s481_s26 = sshll.u32 %s575_s25, 4  ;;  %s482_s26 = int_to_ptr.vmem [resolvable:$false] %s481_s26 }
  0x24   : > { %s483_s27 = scalar_lea.vmem %s482_s26, 512  ;;  %p484_p9 = scmp.lt.s32.totalorder %s666_s4, %s482_s26 }
  0x25   : > { %p479_p6 = pnand %p477_p3, %p463_p5  ;;  %p485_p4 = scmp.lt.s32.totalorder %s483_s27, %s476_s20 }
  0x27   : > { %p480_p11 = pneg %p479_p6  ;;  %p486_p10 = por %p485_p4, %p484_p9 }
  0x29   : > { %p487_p12 = pnand %p486_p10, %p480_p11 }
  0x2b   : > { %490 = shalt.err (!%p487_p12)
}
  0x2c   : > { %403 = dma.hbm_to_vmem [thread:$0]  (!%p670_p0), %s664_s30, 256, %s666_s4, %s129_s6  }
  0x2d   : > { %p785_p1 = scmp.lt.s32.totalorder %s573_s14, 3  ;;  %p786_p2 = scmp.ge.s32.totalorder %s573_s14, 1 }
  0x2f   : > { %p148_p5 = pnand %p786_p2, %p785_p1 }
  0x30   : > { %s706_s28 = sand.u32 (!%p148_p5), 1, %s557_s10  }
  0x31   : > { %151 = sbr.rel (%p148_p5) target bundleno = 289 (0x121), region = 28  ;;  %s383_s29 = sshll.u32 (!%p148_p5), %s706_s28, 4 }
  0x32   : > { %s154_s3 = scalar_lea.sflag (!%p148_p5), [#allocation3], %s706_s28  ;;  %s157_s7 = scalar_lea.vmem (!%p148_p5), [#allocation2], %s383_s29 }
  0x38   : > { %544 = dma.done.wait (%p642_p8), %s154_s3, 256  }
  0x39   : > { %546 = vsyncadd (%p642_p8), %s154_s3, 4294967040  ;;  %v576_v0 = vmov 0.0   ;;  %v183_v1 = vld [vmem:[%s157_s7 + $0x8] sm:$0xff]  ;;  %v182_v2 = vld [vmem:[%s157_s7] sm:$0xff]  ;;  %vm184_vm0 = vcmask 64512   ;;  %s384_s21 = sshll.u32 %s706_s28, 5 }
  0x3a   : > { %255 = vmatprep.mubr.f32.mxu0 %v576_v0  ;;  %261 = vmatprep.mubr.f32.mxu1 %v576_v0  ;;  %v180_v3 = vld [vmem:[%s777_s1] sm:$0xff]  ;;  %v181_v4 = vld [vmem:[%s777_s1 + $0x8] sm:$0xff]  ;;  %s177_s8 = scalar_lea.vmem [#allocation5], %s384_s21  ;;  %s393_s16 = sshll.u32 %s565_s12, 9 }
  0x3b   : > { %191 = vmatprep.subr.mxu0 %v183_v1  ;;  %394 = vmatprep.subr.mxu1 %v183_v1  ;;  %s288_s15 = sshll.u32 %s177_s8, 4  ;;  %s727_s20 = scalar_lea.hbm %s778_s2, %s393_s16  ;;  %s722_s15 = int_to_ptr.vmem [resolvable:$true] %s288_s15 }
  0x3c   : > { %192 = vmatpush1.msra.mxu0 %v182_v2  ;;  %395 = vmatpush1.msra.mxu1 %v182_v2  ;;  %s273_s25 = scalar_lea.sflag [#allocation4], %s706_s28  ;;  %s491_s12 = scalar_lea.vmem %s722_s15, 512 }
  0x3d   : > { %385 = vmatmul.mubr.msk.f32.vlgmr.msra.gmra.mrb[0].mxu0 %vm184_vm0, %v180_v3  ;;  %386 = vmatmul.mubr.msk.f32.vlgmr.msra.gmra.mrb[0].mxu1 %vm184_vm0, %v181_v4  ;;  %p492_p8 = scmp.ne.s32.totalorder %s722_s15, %s491_s12  ;;  %p787_p9 = scmp.ne.s32.totalorder %s782_s22, 0 }
  0x3e   : > { %s577_s26 = smov [#allocation5]  }
  0x3f   : > { %p493_p11 = pnand %p492_p8, %p787_p9  ;;  %s495_s27 = sshll.u32 %s577_s26, 4  ;;  %s496_s27 = int_to_ptr.vmem [resolvable:$false] %s495_s27 }
  0x40   : > { %s497_s29 = scalar_lea.vmem %s496_s27, 1024  ;;  %p498_p7 = scmp.lt.s32.totalorder %s722_s15, %s496_s27 }
  0x41   : > { %p494_p0 = pneg %p493_p11  ;;  %p499_p13 = scmp.lt.s32.totalorder %s497_s29, %s491_s12 }
  0x43   : > { %p500_p3 = por %p499_p13, %p498_p7 }
  0x45   : > { %p501_p6 = pnand %p500_p3, %p494_p0 }
 0x110   : > { %v257_v5 = vpop.f32.mrb[0].mxu0  ;;  %v263_v6 = vpop.f32.mrb[0].mxu1 }
 0x111   : > { %268 = vst [vmem:[%s177_s8] sm:$0xff] %v257_v5  ;;  %270 = vst [vmem:[%s177_s8 + $0x10] sm:$0xff] %v263_v6  ;;  %v259_v7 = vpop.f32.mrb[1].mxu0  ;;  %v265_v8 = vpop.f32.mrb[1].mxu1 }
 0x112   : > { %269 = vst [vmem:[%s177_s8 + $0x8] sm:$0xff] %v259_v7  ;;  %271 = vst [vmem:[%s177_s8 + $0x18] sm:$0xff] %v265_v8 }
 0x113   : > { %504 = shalt.err (!%p501_p6)
}
 0x114   : > { %s505_s3 = scalar_lea.hbm %s727_s20, 512  ;;  %s509_s4 = scalar_lea.hbm %s778_s2, 1024 }
 0x115   : > { %p506_p4 = scmp.ne.s32.totalorder %s727_s20, %s505_s3  ;;  %p510_p1 = scmp.lt.u32.totalorder %s727_s20, %s778_s2 }
 0x116   : > { %p511_p2 = scmp.lt.u32.totalorder %s509_s4, %s505_s3  ;;  %p513_p8 = scmp.lt.u32.totalorder %s505_s3, %s727_s20 }
 0x117   : > { %p507_p10 = pnand %p506_p4, %p787_p9 }
 0x118   : > { %p512_p5 = por %p511_p2, %p510_p1 }
 0x119   : > { %p508_p12 = pneg %p507_p10 }
 0x11a   : > { %p514_p11 = por %p513_p8, %p512_p5 }
 0x11c   : > { %p515_p0 = pnand %p514_p11, %p508_p12 }
 0x11e   : > { %518 = shalt.err (!%p515_p0)
}
 0x11f   : > { %s578_s21 = smov 256   ;;  %s579_s8 = smov 16  }
 0x120   : > { %398 = dma.vmem_to_hbm [thread:$0]  (%p787_p9), %s722_s15, 512, %s727_s20, %s273_s25, %s578_s21, %s578_s21, %s579_s8  }
 0x121 PF: > { %s303_s16 = sand.u32 1, %s553_s9   ;;  %p788_p7 = scmp.ne.s32.totalorder %s783_s24, 0 }
 0x122   : > { %p789_p13 = scmp.ge.s32.totalorder %s573_s14, 2  ;;  %s304_s18 = scalar_lea.sflag [#allocation4], %s303_s16 }
 0x124   : > { %p405_p3 = pnand %p789_p13, %p788_p7 }
 0x126   : > { %548 = dma.done.wait (!%p405_p3), %s304_s18, 512  }
 0x127   : > { %550 = vsyncadd (!%p405_p3), %s304_s18, 4294966784  ;;  %s18_s14 = sadd.s32 1, %s573_s14   ;;  %s790_s9 = smov %s557_s10 }
 0x128   : > { %p15_p6 = scmp.ge.s32.totalorder %s18_s14, 4   ;;  %s791_s10 = smov %s561_s11 }
 0x129   : > { %s792_s11 = smov %s651_s23  ;;  %s793_s12 = smov %s569_s13 }
 0x12a   : > { %s794_s13 = smov %s796_s17  ;;  %17 = sbr.rel (!%p15_p6) target bundleno = 6 (0x6), region = 73 }
 0x131   :  { %309 = vsyncpa [#allocation3], 1 }
 0x132   :  { %311 = vsyncpa [#allocation3 + $0x1], 1 }
 0x133   :  { %312 = vsyncpa [#allocation4], 1 }
 0x134   :  { %314 = vsyncpa [#allocation4 + $0x1], 1 }

</bundles_post_ra>
